<compile_context>
chip_gen: v5e
topology: v5e:2x2
jax: 0.10.0
libtpu: 0.0.40
codegen_flags: <defaults>
</compile_context>

<pallas_src>
import math

import jax
import jax.numpy as jnp
from jax import lax
from jax.experimental import pallas as pl
from jax.experimental.pallas import tpu as pltpu

# ---------------- synthetic (small) config ----------------
NUM_IMAGES = 2
C_FEAT = 8                 # feature channels (in_channels of box head)
H_FEAT = W_FEAT = 16       # feature map spatial size
STRIDE = 4                 # feature stride of the single in_feature level
IMG_H = H_FEAT * STRIDE    # 64
IMG_W = W_FEAT * STRIDE    # 64
POOLER_RES = 7             # cfg.MODEL.ROI_BOX_HEAD.POOLER_RESOLUTION
SAMPLING_RATIO = 2         # cfg.MODEL.ROI_BOX_HEAD.POOLER_SAMPLING_RATIO
NUM_CLASSES = 5            # cfg.MODEL.ROI_HEADS.NUM_CLASSES
FC_DIM = 32                # box head fc dim (num_fc = 2)
PROPOSALS_PER_IMG = 8
BBOX_REG_WEIGHTS = (10.0, 10.0, 5.0, 5.0)   # Box2BoxTransform weights
SCALE_CLAMP = math.log(1000.0 / 16.0)
SCORE_THRESH = 0.05        # cfg.MODEL.ROI_HEADS.SCORE_THRESH_TEST
NMS_THRESH = 0.5           # cfg.MODEL.ROI_HEADS.NMS_THRESH_TEST
DET_PER_IMG = 100          # cfg.TEST.DETECTIONS_PER_IMAGE

PP = POOLER_RES * POOLER_RES          # 49
D_IN = C_FEAT * PP                    # 392  (C, P, P) flattened, like torch.flatten


# ============================================================
# ROIAlign interpolation matrices (aligned=True semantics), built in JAX.
# ============================================================
def _bilinear_weights(coords, size):
    """Per-sample 1-D bilinear interpolation weights (ROIAlign semantics)."""
    valid = (coords >= -1.0) & (coords <= size)
    c = jnp.maximum(coords, 0.0)
    low = jnp.minimum(jnp.floor(c), size - 1.0)
    c = jnp.where(low >= size - 1.0, low, c)
    high = jnp.minimum(low + 1.0, size - 1.0)
    lw = c - low
    hw = 1.0 - lw
    w = (jax.nn.one_hot(low.astype(jnp.int32), size) * hw[..., None]
         + jax.nn.one_hot(high.astype(jnp.int32), size) * lw[..., None])
    return w * valid[..., None].astype(w.dtype)


def _interp_matrices(boxes, scale, H, W, P, S):
    """Build (R,P,H) and (R,P,W) S-averaged interpolation matrices (aligned=True)."""
    x1 = boxes[:, 0] * scale - 0.5
    y1 = boxes[:, 1] * scale - 0.5
    x2 = boxes[:, 2] * scale - 0.5
    y2 = boxes[:, 3] * scale - 0.5
    bin_w = (x2 - x1) / P
    bin_h = (y2 - y1) / P
    pidx = jnp.arange(P, dtype=jnp.float32)
    sidx = (jnp.arange(S, dtype=jnp.float32) + 0.5) / S
    off = pidx[:, None] + sidx[None, :]                        # (P, S)
    ys = y1[:, None, None] + bin_h[:, None, None] * off[None]  # (R, P, S)
    xs = x1[:, None, None] + bin_w[:, None, None] * off[None]
    ay = _bilinear_weights(ys, H).mean(axis=2)                 # (R, P, H)
    ax = _bilinear_weights(xs, W).mean(axis=2)                 # (R, P, W)
    return ay, ax


# ============================================================
# Kernel 1: ROIAlign (box_pooler) -> one matmul per image.
# pooled_T[i] = feat[i] (C, H*W) @ A_T[i] (H*W, Ri*P*P)
# ============================================================
def _roi_align_kernel(feat_ref, at_ref, out_ref):
    out_ref[0] = jnp.dot(feat_ref[0], at_ref[0],
                         preferred_element_type=jnp.float32)


def roi_align_pallas(features, boxes_flat, scale, out_res, sampling_ratio):
    """features (N,C,H,W); boxes_flat (N*Ri,4) grouped by image -> x (N*Ri, C*P*P)."""
    N, C, H, W = features.shape
    R = boxes_flat.shape[0]
    Ri = R // N
    P = out_res
    pp = P * P
    HW = H * W

    ay, ax = _interp_matrices(boxes_flat, scale, H, W, P, sampling_ratio)
    # A[r, py*P+px, y*W+x] = ay[r,py,y] * ax[r,px,x]   (folds the SxS average)
    A = (ay[:, :, None, :, None] * ax[:, None, :, None, :]).reshape(R, pp, HW)
    At = A.reshape(N, Ri * pp, HW).transpose(0, 2, 1)          # (N, HW, Ri*pp)
    feat2 = features.reshape(N, C, HW)                          # (N, C, HW)

    pooled_t = pl.pallas_call(
        _roi_align_kernel,
        out_shape=jax.ShapeDtypeStruct((N, C, Ri * pp), jnp.float32),
        grid=(N,),
        in_specs=[
            pl.BlockSpec((1, C, HW), lambda i: (i, 0, 0)),
            pl.BlockSpec((1, HW, Ri * pp), lambda i: (i, 0, 0)),
        ],
        out_specs=pl.BlockSpec((1, C, Ri * pp), lambda i: (i, 0, 0)),
        compiler_params=pltpu.CompilerParams(dimension_semantics=("parallel",)),
    )(feat2, At)

    # (N, C, Ri, pp) -> (N, Ri, C, pp) -> (R, C*pp)  == torch.flatten of (C, P, P)
    x = pooled_t.reshape(N, C, Ri, pp).transpose(0, 2, 1, 3).reshape(R, C * pp)
    return x


# ============================================================
# Kernel 2 (fused): box_head (fc1->relu->fc2->relu) + box_predictor
#                   + FastRCNNOutputs inference dense math.
# One grid step per image; image (H, W) scalars come from SMEM.
# ============================================================
def _head_infer_kernel(imsz_ref, x_ref, w1_ref, b1_ref, w2_ref, b2_ref,
                       wcat_ref, bcat_ref, pbox_ref,
                       probs_ref, boxes_ref):
    i = pl.program_id(0)
    K = NUM_CLASSES

    h = jnp.dot(x_ref[...], w1_ref[...],
                preferred_element_type=jnp.float32) + b1_ref[...]
    h = jnp.maximum(h, 0.0)
    h = jnp.dot(h, w2_ref[...],
                preferred_element_type=jnp.float32) + b2_ref[...]
    h = jnp.maximum(h, 0.0)
    out = jnp.dot(h, wcat_ref[...],
                  preferred_element_type=jnp.float32) + bcat_ref[...]

    # --- softmax over class logits ---
    logits = out[:, :K + 1]
    m = jnp.max(logits, axis=-1, keepdims=True)
    e = jnp.exp(logits - m)
    probs_ref[...] = e / jnp.sum(e, axis=-1, keepdims=True)

    # --- Box2BoxTransform.apply_deltas (deltas grouped [dx|dy|dw|dh], K each) ---
    dg = out[:, K + 1:]                     # (Ri, 4K)
    b = pbox_ref[...]                       # (Ri, 4) proposal boxes
    widths = b[:, 2:3] - b[:, 0:1]
    heights = b[:, 3:4] - b[:, 1:2]
    ctr_x = b[:, 0:1] + 0.5 * widths
    ctr_y = b[:, 1:2] + 0.5 * heights

    wx, wy, ww, wh = BBOX_REG_WEIGHTS
    dx = dg[:, 0:K] / wx
    dy = dg[:, K:2 * K] / wy
    dw = jnp.minimum(dg[:, 2 * K:3 * K] / ww, SCALE_CLAMP)
    dh = jnp.minimum(dg[:, 3 * K:4 * K] / wh, SCALE_CLAMP)

    pred_ctr_x = dx * widths + ctr_x
    pred_ctr_y = dy * heights + ctr_y
    pred_w = jnp.exp(dw) * widths
    pred_h = jnp.exp(dh) * heights

    # Detectron2 image_size convention: (H, W)
    img_h = imsz_ref[i, 0].astype(jnp.float32)
    img_w = imsz_ref[i, 1].astype(jnp.float32)

    x1 = jnp.clip(pred_ctr_x - 0.5 * pred_w, 0.0, img_w)
    y1 = jnp.clip(pred_ctr_y - 0.5 * pred_h, 0.0, img_h)
    x2 = jnp.clip(pred_ctr_x + 0.5 * pred_w, 0.0, img_w)
    y2 = jnp.clip(pred_ctr_y + 0.5 * pred_h, 0.0, img_h)

    # single grouped store: columns [x1(K) | y1(K) | x2(K) | y2(K)]
    boxes_ref[...] = jnp.concatenate([x1, y1, x2, y2], axis=-1)


def box_head_infer_pallas(x, proposal_boxes_flat, img_sizes_hw, params, N, Ri):
    K = NUM_CLASSES
    n_cls = K + 1
    D = x.shape[1]

    # group bbox-pred columns: wb_g[:, coord*K + k] = wb[:, k*4 + coord]
    wb_g = params["wb"].reshape(FC_DIM, K, 4).transpose(0, 2, 1).reshape(FC_DIM, 4 * K)
    bb_g = params["bb"].reshape(1, K, 4).transpose(0, 2, 1).reshape(1, 4 * K)
    wcat = jnp.concatenate([params["wc"], wb_g], axis=1)     # (FC_DIM, n_cls + 4K)
    bcat = jnp.concatenate([params["bc"], bb_g], axis=1)     # (1, n_cls + 4K)
    NC = n_cls + 4 * K

    probs, boxes_g = pl.pallas_call(
        _head_infer_kernel,
        out_shape=(jax.ShapeDtypeStruct((N * Ri, n_cls), jnp.float32),
                   jax.ShapeDtypeStruct((N * Ri, 4 * K), jnp.float32)),
        grid_spec=pltpu.PrefetchScalarGridSpec(
            num_scalar_prefetch=1,
            grid=(N,),
            in_specs=[
                pl.BlockSpec((Ri, D), lambda i, imsz: (i, 0)),          # x
                pl.BlockSpec((D, FC_DIM), lambda i, imsz: (0, 0)),       # w1
                pl.BlockSpec((1, FC_DIM), lambda i, imsz: (0, 0)),       # b1
                pl.BlockSpec((FC_DIM, FC_DIM), lambda i, imsz: (0, 0)),  # w2
                pl.BlockSpec((1, FC_DIM), lambda i, imsz: (0, 0)),       # b2
                pl.BlockSpec((FC_DIM, NC), lambda i, imsz: (0, 0)),      # wcat
                pl.BlockSpec((1, NC), lambda i, imsz: (0, 0)),           # bcat
                pl.BlockSpec((Ri, 4), lambda i, imsz: (i, 0)),           # proposals
            ],
            out_specs=[
                pl.BlockSpec((Ri, n_cls), lambda i, imsz: (i, 0)),
                pl.BlockSpec((Ri, 4 * K), lambda i, imsz: (i, 0)),
            ],
        ),
        compiler_params=pltpu.CompilerParams(dimension_semantics=("parallel",)),
    )(img_sizes_hw, x, params["w1"], params["b1"], params["w2"], params["b2"],
      wcat, bcat, proposal_boxes_flat)
    return probs, boxes_g


# ============================================================
# Plain-JAX glue: score thresholding, class-aware greedy NMS, top-k.
# (sequential control flow -> not a Pallas kernel; vmapped over images)
# ============================================================
def _pairwise_iou(a, b):
    area_a = (a[:, 2] - a[:, 0]) * (a[:, 3] - a[:, 1])
    area_b = (b[:, 2] - b[:, 0]) * (b[:, 3] - b[:, 1])
    lt = jnp.maximum(a[:, None, :2], b[None, :, :2])
    rb = jnp.minimum(a[:, None, 2:], b[None, :, 2:])
    wh = jnp.clip(rb - lt, 0.0, None)
    inter = wh[..., 0] * wh[..., 1]
    union = area_a[:, None] + area_b[None, :] - inter
    return jnp.where(union > 0, inter / union, 0.0)


def _nms_topk_single(boxes, scores, valid, iou_thresh, topk):
    """boxes (n,4), scores (n,), valid (n,) for ONE image; n = Ri*K."""
    n = boxes.shape[0]
    K = NUM_CLASSES
    classes = jnp.broadcast_to(jnp.arange(K), (n // K, K)).reshape(-1)
    # class-aware NMS via per-class coordinate offsets
    offset = classes.astype(jnp.float32)[:, None] * (max(IMG_W, IMG_H) + 2.0)
    nb = boxes + offset
    s = jnp.where(valid, scores, -1.0)
    order = jnp.argsort(-s)
    nb_s, s_s = nb[order], s[order]
    ious = _pairwise_iou(nb_s, nb_s)
    idx = jnp.arange(n)

    def body(i, keep):
        sup = (ious[i] > iou_thresh) & (idx > i) & keep[i]
        return keep & ~sup

    keep = lax.fori_loop(0, n, body, s_s >= 0.0)
    final = jnp.where(keep, s_s, -1.0)
    sel = jnp.argsort(-final)[:topk]
    take = order[sel]
    return boxes[take], scores[take], classes[take], final[sel] >= 0.0


# ============================================================
# StandardROIHeads.forward (inference)
# ============================================================
def _forward_impl(feat, proposal_boxes, img_sizes_hw, params):
    """feat (N,C,H,W); proposal_boxes (N,Ri,4); img_sizes_hw (N,2) int32 [H,W]."""
    N = feat.shape[0]
    Ri = proposal_boxes.shape[1]
    K = NUM_CLASSES
    boxes_flat = proposal_boxes.reshape(N * Ri, 4)

    # box_pooler (ROIAlignV2, single level, scale = 1/stride) -> (R, C*P*P)
    x = roi_align_pallas(feat, boxes_flat, 1.0 / STRIDE, POOLER_RES, SAMPLING_RATIO)

    # box_head + box_predictor + FastRCNNOutputs dense inference math (fused)
    probs, boxes_g = box_head_infer_pallas(x, boxes_flat, img_sizes_hw, params, N, Ri)

    # ungroup boxes: (R, 4K)[x1|y1|x2|y2] -> (R, K, 4)
    pred_boxes = boxes_g.reshape(N * Ri, 4, K).transpose(0, 2, 1)

    scores_fg = probs[:, :K]                           # drop background column
    scores_b = scores_fg.reshape(N, Ri * K)
    boxes_b = pred_boxes.reshape(N, Ri * K, 4)
    valid_b = scores_b > SCORE_THRESH

    topk = min(DET_PER_IMG, Ri * K)
    nms = lambda b, s, v: _nms_topk_single(b, s, v, NMS_THRESH, topk)
    pb, sc, cl, vd = jax.vmap(nms)(boxes_b, scores_b, valid_b)
    return {"pred_boxes": pb, "scores": sc, "pred_classes": cl, "valid": vd}


_forward_jit = jax.jit(_forward_impl)


def standard_roi_heads_forward(features, proposal_boxes, img_sizes_hw, params):
    """features: dict{'p2': (N,C,H,W)}, proposal_boxes: (N, Ri, 4)."""
    feat = features["p2"]
    batched = _forward_jit(feat, proposal_boxes, img_sizes_hw, params)
    N = feat.shape[0]
    results = [{k: v[i] for k, v in batched.items()} for i in range(N)]
    return results, {}


def init_params(key):
    ks = jax.random.split(key, 4)
    return {
        "w1": 0.05 * jax.random.normal(ks[0], (D_IN, FC_DIM), jnp.float32),
        "b1": jnp.zeros((1, FC_DIM), jnp.float32),
        "w2": 0.05 * jax.random.normal(ks[1], (FC_DIM, FC_DIM), jnp.float32),
        "b2": jnp.zeros((1, FC_DIM), jnp.float32),
        "wc": 0.01 * jax.random.normal(ks[2], (FC_DIM, NUM_CLASSES + 1), jnp.float32),
        "bc": jnp.zeros((1, NUM_CLASSES + 1), jnp.float32),
        "wb": 0.001 * jax.random.normal(ks[3], (FC_DIM, NUM_CLASSES * 4), jnp.float32),
        "bb": jnp.zeros((1, NUM_CLASSES * 4), jnp.float32),
    }


if __name__ == "__main__":
    key = jax.random.PRNGKey(0)
    k_feat, k_box, k_param = jax.random.split(key, 3)

    features = {"p2": jax.random.normal(
        k_feat, (NUM_IMAGES, C_FEAT, H_FEAT, W_FEAT), jnp.float32)}

    pts = jax.random.uniform(k_box, (NUM_IMAGES, PROPOSALS_PER_IMG, 4),
                             jnp.float32)
    scale_xyxy = jnp.array([IMG_W, IMG_H, IMG_W, IMG_H], jnp.float32)
    pts = pts * scale_xyxy
    x1 = jnp.minimum(pts[..., 0], pts[..., 2])
    y1 = jnp.minimum(pts[..., 1], pts[..., 3])
    x2 = jnp.clip(jnp.maximum(pts[..., 0], pts[..., 2]) + 2.0, 0, IMG_W)
    y2 = jnp.clip(jnp.maximum(pts[..., 1], pts[..., 3]) + 2.0, 0, IMG_H)
    proposal_boxes = jnp.stack([x1, y1, x2, y2], axis=-1)

    # Detectron2 image_size convention is (H, W)
    img_sizes_hw = jnp.tile(jnp.array([[IMG_H, IMG_W]], jnp.int32), (NUM_IMAGES, 1))

    params = init_params(k_param)

    results, losses = standard_roi_heads_forward(features, proposal_boxes,
                                                 img_sizes_hw, params)
    for r in results:
        jax.block_until_ready(r["pred_boxes"])
        jax.block_until_ready(r["scores"])
        jax.block_until_ready(r["pred_classes"])
    print("KERNEL_OK")
</pallas_src>

<mosaic_0001>
module attributes {stable_mosaic.version = 11 : i64} {
  func.func @_roi_align_kernel(%arg0: i32, %arg1: memref<1x8x256xf32, #tpu.memory_space<vmem>>, %arg2: memref<1x256x392xf32, #tpu.memory_space<vmem>>, %arg3: memref<1x8x392xf32, #tpu.memory_space<vmem>>) attributes {dimension_semantics = [#tpu.dimension_semantics<parallel>], iteration_bounds = array<i64: 2>, scalar_prefetch = 0 : i64, scratch_operands = 0 : i64, tpu.core_type = #tpu.core_type<tc>, window_params = [{transform_indices = @transform_0, window_bounds = array<i64: 1, 8, 256>}, {transform_indices = @transform_1, window_bounds = array<i64: 1, 256, 392>}, {transform_indices = @transform_2, window_bounds = array<i64: 1, 8, 392>}]} {
    %c0 = arith.constant 0 : index
    %c0_0 = arith.constant 0 : index
    %c0_1 = arith.constant 0 : index
    %0 = vector.load %arg1[%c0, %c0_0, %c0_1] : memref<1x8x256xf32, #tpu.memory_space<vmem>>, vector<1x8x256xf32>
    %1 = vector.shape_cast %0 : vector<1x8x256xf32> to vector<8x256xf32>
    %c0_2 = arith.constant 0 : index
    %c0_3 = arith.constant 0 : index
    %c0_4 = arith.constant 0 : index
    %2 = vector.load %arg2[%c0_2, %c0_3, %c0_4] : memref<1x256x392xf32, #tpu.memory_space<vmem>>, vector<1x256x392xf32>
    %3 = vector.shape_cast %2 : vector<1x256x392xf32> to vector<256x392xf32>
    %cst = arith.constant dense<0.000000e+00> : vector<8x392xf32>
    %4 = tpu.matmul %1, %3, %cst {dimension_numbers = #tpu.dot_dimension_numbers<[1], [0], [0], [1], [0, 0, 1, 1], [], []>} : vector<8x256xf32>, vector<256x392xf32>, vector<8x392xf32> -> vector<8x392xf32>
    %c0_5 = arith.constant 0 : index
    %c0_6 = arith.constant 0 : index
    %c0_7 = arith.constant 0 : index
    %5 = vector.load %arg3[%c0_5, %c0_6, %c0_7] : memref<1x8x392xf32, #tpu.memory_space<vmem>>, vector<1x8x392xf32>
    %6 = vector.shape_cast %5 : vector<1x8x392xf32> to vector<8x392xf32>
    %7 = vector.shape_cast %4 : vector<8x392xf32> to vector<1x8x392xf32>
    tpu.vector_store %arg3[%c0_5, %c0_6, %c0_7], %7 {strides = array<i32>} : memref<1x8x392xf32, #tpu.memory_space<vmem>>, vector<1x8x392xf32>,
    return
  }
  func.func @transform_0(%arg0: i32) -> (i32, i32, i32) {
    %c0_i32 = arith.constant 0 : i32
    %c0_i32_0 = arith.constant 0 : i32
    %c0_i32_1 = arith.constant 0 : i32
    return %arg0, %c0_i32, %c0_i32_0 : i32, i32, i32
  }
  func.func @transform_1(%arg0: i32) -> (i32, i32, i32) {
    %c0_i32 = arith.constant 0 : i32
    %c0_i32_0 = arith.constant 0 : i32
    %c0_i32_1 = arith.constant 0 : i32
    return %arg0, %c0_i32, %c0_i32_0 : i32, i32, i32
  }
  func.func @transform_2(%arg0: i32) -> (i32, i32, i32) {
    %c0_i32 = arith.constant 0 : i32
    %c0_i32_0 = arith.constant 0 : i32
    %c0_i32_1 = arith.constant 0 : i32
    return %arg0, %c0_i32, %c0_i32_0 : i32, i32, i32
  }
}

module attributes {stable_mosaic.version = 11 : i64} {
  func.func @_head_infer_kernel(%arg0: i32, %arg1: memref<2x2xi32, #tpu.memory_space<smem>>, %arg2: memref<8x392xf32, #tpu.memory_space<vmem>>, %arg3: memref<392x32xf32, #tpu.memory_space<vmem>>, %arg4: memref<1x32xf32, #tpu.memory_space<vmem>>, %arg5: memref<32x32xf32, #tpu.memory_space<vmem>>, %arg6: memref<1x32xf32, #tpu.memory_space<vmem>>, %arg7: memref<32x26xf32, #tpu.memory_space<vmem>>, %arg8: memref<1x26xf32, #tpu.memory_space<vmem>>, %arg9: memref<8x4xf32, #tpu.memory_space<vmem>>, %arg10: memref<8x6xf32, #tpu.memory_space<vmem>>, %arg11: memref<8x20xf32, #tpu.memory_space<vmem>>) attributes {dimension_semantics = [#tpu.dimension_semantics<parallel>], iteration_bounds = array<i64: 2>, scalar_prefetch = 1 : i64, scratch_operands = 0 : i64, tpu.core_type = #tpu.core_type<tc>, window_params = [{transform_indices = @transform_0, window_bounds = array<i64: 8, 392>}, {pipeline_mode = #tpu.pipeline_mode<synchronous>, transform_indices = @transform_1, window_bounds = array<i64: 392, 32>}, {pipeline_mode = #tpu.pipeline_mode<synchronous>, transform_indices = @transform_2, window_bounds = array<i64: 1, 32>}, {pipeline_mode = #tpu.pipeline_mode<synchronous>, transform_indices = @transform_3, window_bounds = array<i64: 32, 32>}, {pipeline_mode = #tpu.pipeline_mode<synchronous>, transform_indices = @transform_4, window_bounds = array<i64: 1, 32>}, {pipeline_mode = #tpu.pipeline_mode<synchronous>, transform_indices = @transform_5, window_bounds = array<i64: 32, 26>}, {pipeline_mode = #tpu.pipeline_mode<synchronous>, transform_indices = @transform_6, window_bounds = array<i64: 1, 26>}, {transform_indices = @transform_7, window_bounds = array<i64: 8, 4>}, {transform_indices = @transform_8, window_bounds = array<i64: 8, 6>}, {transform_indices = @transform_9, window_bounds = array<i64: 8, 20>}]} {
    %c0 = arith.constant 0 : index
    %c0_0 = arith.constant 0 : index
    %0 = vector.load %arg2[%c0, %c0_0] : memref<8x392xf32, #tpu.memory_space<vmem>>, vector<8x392xf32>
    %c0_1 = arith.constant 0 : index
    %c0_2 = arith.constant 0 : index
    %1 = vector.load %arg3[%c0_1, %c0_2] : memref<392x32xf32, #tpu.memory_space<vmem>>, vector<392x32xf32>
    %cst = arith.constant dense<0.000000e+00> : vector<8x32xf32>
    %2 = tpu.matmul %0, %1, %cst {dimension_numbers = #tpu.dot_dimension_numbers<[1], [0], [0], [1], [0, 0, 1, 1], [], []>} : vector<8x392xf32>, vector<392x32xf32>, vector<8x32xf32> -> vector<8x32xf32>
    %c0_3 = arith.constant 0 : index
    %c0_4 = arith.constant 0 : index
    %3 = vector.load %arg4[%c0_3, %c0_4] : memref<1x32xf32, #tpu.memory_space<vmem>>, vector<1x32xf32>
    %4 = vector.broadcast %3 : vector<1x32xf32> to vector<8x32xf32>
    %5 = arith.addf %2, %4 : vector<8x32xf32>
    %cst_5 = arith.constant 0.000000e+00 : f32
    %6 = vector.broadcast %cst_5 : f32 to vector<8x32xf32>
    %7 = arith.maximumf %5, %6 : vector<8x32xf32>
    %c0_6 = arith.constant 0 : index
    %c0_7 = arith.constant 0 : index
    %8 = vector.load %arg5[%c0_6, %c0_7] : memref<32x32xf32, #tpu.memory_space<vmem>>, vector<32x32xf32>
    %cst_8 = arith.constant dense<0.000000e+00> : vector<8x32xf32>
    %9 = tpu.matmul %7, %8, %cst_8 {dimension_numbers = #tpu.dot_dimension_numbers<[1], [0], [0], [1], [0, 0, 1, 1], [], []>} : vector<8x32xf32>, vector<32x32xf32>, vector<8x32xf32> -> vector<8x32xf32>
    %c0_9 = arith.constant 0 : index
    %c0_10 = arith.constant 0 : index
    %10 = vector.load %arg6[%c0_9, %c0_10] : memref<1x32xf32, #tpu.memory_space<vmem>>, vector<1x32xf32>
    %11 = vector.broadcast %10 : vector<1x32xf32> to vector<8x32xf32>
    %12 = arith.addf %9, %11 : vector<8x32xf32>
    %cst_11 = arith.constant 0.000000e+00 : f32
    %13 = vector.broadcast %cst_11 : f32 to vector<8x32xf32>
    %14 = arith.maximumf %12, %13 : vector<8x32xf32>
    %c0_12 = arith.constant 0 : index
    %c0_13 = arith.constant 0 : index
    %15 = vector.load %arg7[%c0_12, %c0_13] : memref<32x26xf32, #tpu.memory_space<vmem>>, vector<32x26xf32>
    %cst_14 = arith.constant dense<0.000000e+00> : vector<8x26xf32>
    %16 = tpu.matmul %14, %15, %cst_14 {dimension_numbers = #tpu.dot_dimension_numbers<[1], [0], [0], [1], [0, 0, 1, 1], [], []>} : vector<8x32xf32>, vector<32x26xf32>, vector<8x26xf32> -> vector<8x26xf32>
    %c0_15 = arith.constant 0 : index
    %c0_16 = arith.constant 0 : index
    %17 = vector.load %arg8[%c0_15, %c0_16] : memref<1x26xf32, #tpu.memory_space<vmem>>, vector<1x26xf32>
    %18 = vector.broadcast %17 : vector<1x26xf32> to vector<8x26xf32>
    %19 = arith.addf %16, %18 : vector<8x26xf32>
    %20 = vector.extract_strided_slice %19 {offsets = [0, 0], sizes = [8, 6], strides = [1, 1]} : vector<8x26xf32> to vector<8x6xf32>
    %cst_17 = arith.constant dense<0xFF800000> : vector<8xf32>
    %21 = vector.multi_reduction <maximumf>, %20, %cst_17 [1] : vector<8x6xf32> to vector<8xf32>
    %22 = vector.shape_cast %21 : vector<8xf32> to vector<8x1xf32>
    %23 = vector.broadcast %22 : vector<8x1xf32> to vector<8x6xf32>
    %24 = arith.subf %20, %23 : vector<8x6xf32>
    %25 = math.exp %24 : vector<8x6xf32>
    %cst_18 = arith.constant dense<0.000000e+00> : vector<8xf32>
    %26 = vector.multi_reduction <add>, %25, %cst_18 [1] : vector<8x6xf32> to vector<8xf32>
    %27 = vector.shape_cast %26 : vector<8xf32> to vector<8x1xf32>
    %28 = vector.broadcast %27 : vector<8x1xf32> to vector<8x6xf32>
    %29 = arith.divf %25, %28 : vector<8x6xf32>
    %c0_19 = arith.constant 0 : index
    %c0_20 = arith.constant 0 : index
    %30 = vector.load %arg10[%c0_19, %c0_20] : memref<8x6xf32, #tpu.memory_space<vmem>>, vector<8x6xf32>
    tpu.vector_store %arg10[%c0_19, %c0_20], %29 {strides = array<i32>} : memref<8x6xf32, #tpu.memory_space<vmem>>, vector<8x6xf32>,
    %31 = vector.extract_strided_slice %19 {offsets = [0, 6], sizes = [8, 20], strides = [1, 1]} : vector<8x26xf32> to vector<8x20xf32>
    %c0_21 = arith.constant 0 : index
    %c0_22 = arith.constant 0 : index
    %32 = vector.load %arg9[%c0_21, %c0_22] : memref<8x4xf32, #tpu.memory_space<vmem>>, vector<8x4xf32>
    %33 = vector.extract_strided_slice %32 {offsets = [0, 2], sizes = [8, 1], strides = [1, 1]} : vector<8x4xf32> to vector<8x1xf32>
    %34 = vector.extract_strided_slice %32 {offsets = [0, 0], sizes = [8, 1], strides = [1, 1]} : vector<8x4xf32> to vector<8x1xf32>
    %35 = arith.subf %33, %34 : vector<8x1xf32>
    %36 = vector.extract_strided_slice %32 {offsets = [0, 3], sizes = [8, 1], strides = [1, 1]} : vector<8x4xf32> to vector<8x1xf32>
    %37 = vector.extract_strided_slice %32 {offsets = [0, 1], sizes = [8, 1], strides = [1, 1]} : vector<8x4xf32> to vector<8x1xf32>
    %38 = arith.subf %36, %37 : vector<8x1xf32>
    %39 = vector.extract_strided_slice %32 {offsets = [0, 0], sizes = [8, 1], strides = [1, 1]} : vector<8x4xf32> to vector<8x1xf32>
    %cst_23 = arith.constant 5.000000e-01 : f32
    %40 = vector.broadcast %cst_23 : f32 to vector<8x1xf32>
    %41 = arith.mulf %40, %35 : vector<8x1xf32>
    %42 = arith.addf %39, %41 : vector<8x1xf32>
    %43 = vector.extract_strided_slice %32 {offsets = [0, 1], sizes = [8, 1], strides = [1, 1]} : vector<8x4xf32> to vector<8x1xf32>
    %cst_24 = arith.constant 5.000000e-01 : f32
    %44 = vector.broadcast %cst_24 : f32 to vector<8x1xf32>
    %45 = arith.mulf %44, %38 : vector<8x1xf32>
    %46 = arith.addf %43, %45 : vector<8x1xf32>
    %47 = vector.extract_strided_slice %31 {offsets = [0, 0], sizes = [8, 5], strides = [1, 1]} : vector<8x20xf32> to vector<8x5xf32>
    %cst_25 = arith.constant 1.000000e+01 : f32
    %48 = vector.broadcast %cst_25 : f32 to vector<8x5xf32>
    %49 = arith.divf %47, %48 : vector<8x5xf32>
    %50 = vector.extract_strided_slice %31 {offsets = [0, 5], sizes = [8, 5], strides = [1, 1]} : vector<8x20xf32> to vector<8x5xf32>
    %cst_26 = arith.constant 1.000000e+01 : f32
    %51 = vector.broadcast %cst_26 : f32 to vector<8x5xf32>
    %52 = arith.divf %50, %51 : vector<8x5xf32>
    %53 = vector.extract_strided_slice %31 {offsets = [0, 10], sizes = [8, 5], strides = [1, 1]} : vector<8x20xf32> to vector<8x5xf32>
    %cst_27 = arith.constant 5.000000e+00 : f32
    %54 = vector.broadcast %cst_27 : f32 to vector<8x5xf32>
    %55 = arith.divf %53, %54 : vector<8x5xf32>
    %cst_28 = arith.constant 4.13516665 : f32
    %56 = vector.broadcast %cst_28 : f32 to vector<8x5xf32>
    %57 = arith.minimumf %55, %56 : vector<8x5xf32>
    %58 = vector.extract_strided_slice %31 {offsets = [0, 15], sizes = [8, 5], strides = [1, 1]} : vector<8x20xf32> to vector<8x5xf32>
    %cst_29 = arith.constant 5.000000e+00 : f32
    %59 = vector.broadcast %cst_29 : f32 to vector<8x5xf32>
    %60 = arith.divf %58, %59 : vector<8x5xf32>
    %cst_30 = arith.constant 4.13516665 : f32
    %61 = vector.broadcast %cst_30 : f32 to vector<8x5xf32>
    %62 = arith.minimumf %60, %61 : vector<8x5xf32>
    %63 = vector.broadcast %35 : vector<8x1xf32> to vector<8x5xf32>
    %64 = arith.mulf %49, %63 : vector<8x5xf32>
    %65 = vector.broadcast %42 : vector<8x1xf32> to vector<8x5xf32>
    %66 = arith.addf %64, %65 : vector<8x5xf32>
    %67 = vector.broadcast %38 : vector<8x1xf32> to vector<8x5xf32>
    %68 = arith.mulf %52, %67 : vector<8x5xf32>
    %69 = vector.broadcast %46 : vector<8x1xf32> to vector<8x5xf32>
    %70 = arith.addf %68, %69 : vector<8x5xf32>
    %71 = math.exp %57 : vector<8x5xf32>
    %72 = vector.broadcast %35 : vector<8x1xf32> to vector<8x5xf32>
    %73 = arith.mulf %71, %72 : vector<8x5xf32>
    %74 = math.exp %62 : vector<8x5xf32>
    %75 = vector.broadcast %38 : vector<8x1xf32> to vector<8x5xf32>
    %76 = arith.mulf %74, %75 : vector<8x5xf32>
    %77 = arith.index_cast %arg0 : i32 to index
    %c0_31 = arith.constant 0 : index
    %78 = memref.load %arg1[%77, %c0_31] : memref<2x2xi32, #tpu.memory_space<smem>>
    %79 = arith.sitofp %78 : i32 to f32
    %80 = arith.index_cast %arg0 : i32 to index
    %c1 = arith.constant 1 : index
    %81 = memref.load %arg1[%80, %c1] : memref<2x2xi32, #tpu.memory_space<smem>>
    %82 = arith.sitofp %81 : i32 to f32
    %cst_32 = arith.constant 5.000000e-01 : f32
    %83 = vector.broadcast %cst_32 : f32 to vector<8x5xf32>
    %84 = arith.mulf %83, %73 : vector<8x5xf32>
    %85 = arith.subf %66, %84 : vector<8x5xf32>
    %cst_33 = arith.constant 0.000000e+00 : f32
    %86 = vector.broadcast %cst_33 : f32 to vector<8x5xf32>
    %87 = arith.maximumf %86, %85 : vector<8x5xf32>
    %88 = vector.broadcast %82 : f32 to vector<8x5xf32>
    %89 = arith.minimumf %88, %87 : vector<8x5xf32>
    %cst_34 = arith.constant 5.000000e-01 : f32
    %90 = vector.broadcast %cst_34 : f32 to vector<8x5xf32>
    %91 = arith.mulf %90, %76 : vector<8x5xf32>
    %92 = arith.subf %70, %91 : vector<8x5xf32>
    %cst_35 = arith.constant 0.000000e+00 : f32
    %93 = vector.broadcast %cst_35 : f32 to vector<8x5xf32>
    %94 = arith.maximumf %93, %92 : vector<8x5xf32>
    %95 = vector.broadcast %79 : f32 to vector<8x5xf32>
    %96 = arith.minimumf %95, %94 : vector<8x5xf32>
    %cst_36 = arith.constant 5.000000e-01 : f32
    %97 = vector.broadcast %cst_36 : f32 to vector<8x5xf32>
    %98 = arith.mulf %97, %73 : vector<8x5xf32>
    %99 = arith.addf %66, %98 : vector<8x5xf32>
    %cst_37 = arith.constant 0.000000e+00 : f32
    %100 = vector.broadcast %cst_37 : f32 to vector<8x5xf32>
    %101 = arith.maximumf %100, %99 : vector<8x5xf32>
    %102 = vector.broadcast %82 : f32 to vector<8x5xf32>
    %103 = arith.minimumf %102, %101 : vector<8x5xf32>
    %cst_38 = arith.constant 5.000000e-01 : f32
    %104 = vector.broadcast %cst_38 : f32 to vector<8x5xf32>
    %105 = arith.mulf %104, %76 : vector<8x5xf32>
    %106 = arith.addf %70, %105 : vector<8x5xf32>
    %cst_39 = arith.constant 0.000000e+00 : f32
    %107 = vector.broadcast %cst_39 : f32 to vector<8x5xf32>
    %108 = arith.maximumf %107, %106 : vector<8x5xf32>
    %109 = vector.broadcast %79 : f32 to vector<8x5xf32>
    %110 = arith.minimumf %109, %108 : vector<8x5xf32>
    %111 = tpu.concatenate %89, %96, %103, %110 in 1 : vector<8x5xf32>, vector<8x5xf32>, vector<8x5xf32>, vector<8x5xf32> -> vector<8x20xf32>
    %c0_40 = arith.constant 0 : index
    %c0_41 = arith.constant 0 : index
    %112 = vector.load %arg11[%c0_40, %c0_41] : memref<8x20xf32, #tpu.memory_space<vmem>>, vector<8x20xf32>
    tpu.vector_store %arg11[%c0_40, %c0_41], %111 {strides = array<i32>} : memref<8x20xf32, #tpu.memory_space<vmem>>, vector<8x20xf32>,
    return
  }
  func.func @transform_0(%arg0: i32, %arg1: memref<2x2xi32, #tpu.memory_space<smem>>) -> (i32, i32) {
    %c0_i32 = arith.constant 0 : i32
    %c0_i32_0 = arith.constant 0 : i32
    return %arg0, %c0_i32 : i32, i32
  }
  func.func @transform_1(%arg0: i32, %arg1: memref<2x2xi32, #tpu.memory_space<smem>>) -> (i32, i32) {
    %c0_i32 = arith.constant 0 : i32
    %c0_i32_0 = arith.constant 0 : i32
    %c0_i32_1 = arith.constant 0 : i32
    return %c0_i32, %c0_i32_0 : i32, i32
  }
  func.func @transform_2(%arg0: i32, %arg1: memref<2x2xi32, #tpu.memory_space<smem>>) -> (i32, i32) {
    %c0_i32 = arith.constant 0 : i32
    %c0_i32_0 = arith.constant 0 : i32
    %c0_i32_1 = arith.constant 0 : i32
    return %c0_i32, %c0_i32_0 : i32, i32
  }
  func.func @transform_3(%arg0: i32, %arg1: memref<2x2xi32, #tpu.memory_space<smem>>) -> (i32, i32) {
    %c0_i32 = arith.constant 0 : i32
    %c0_i32_0 = arith.constant 0 : i32
    %c0_i32_1 = arith.constant 0 : i32
    return %c0_i32, %c0_i32_0 : i32, i32
  }
  func.func @transform_4(%arg0: i32, %arg1: memref<2x2xi32, #tpu.memory_space<smem>>) -> (i32, i32) {
    %c0_i32 = arith.constant 0 : i32
    %c0_i32_0 = arith.constant 0 : i32
    %c0_i32_1 = arith.constant 0 : i32
    return %c0_i32, %c0_i32_0 : i32, i32
  }
  func.func @transform_5(%arg0: i32, %arg1: memref<2x2xi32, #tpu.memory_space<smem>>) -> (i32, i32) {
    %c0_i32 = arith.constant 0 : i32
    %c0_i32_0 = arith.constant 0 : i32
    %c0_i32_1 = arith.constant 0 : i32
    return %c0_i32, %c0_i32_0 : i32, i32
  }
  func.func @transform_6(%arg0: i32, %arg1: memref<2x2xi32, #tpu.memory_space<smem>>) -> (i32, i32) {
    %c0_i32 = arith.constant 0 : i32
    %c0_i32_0 = arith.constant 0 : i32
    %c0_i32_1 = arith.constant 0 : i32
    return %c0_i32, %c0_i32_0 : i32, i32
  }
  func.func @transform_7(%arg0: i32, %arg1: memref<2x2xi32, #tpu.memory_space<smem>>) -> (i32, i32) {
    %c0_i32 = arith.constant 0 : i32
    %c0_i32_0 = arith.constant 0 : i32
    return %arg0, %c0_i32 : i32, i32
  }
  func.func @transform_8(%arg0: i32, %arg1: memref<2x2xi32, #tpu.memory_space<smem>>) -> (i32, i32) {
    %c0_i32 = arith.constant 0 : i32
    %c0_i32_0 = arith.constant 0 : i32
    return %arg0, %c0_i32 : i32, i32
  }
  func.func @transform_9(%arg0: i32, %arg1: memref<2x2xi32, #tpu.memory_space<smem>>) -> (i32, i32) {
    %c0_i32 = arith.constant 0 : i32
    %c0_i32_0 = arith.constant 0 : i32
    return %arg0, %c0_i32 : i32, i32
  }
}

</mosaic_0001>

<bundles_post_ra>
// kernel: _forward_impl.2
= control target key start
LH: loop header
LB: loop body
LE: loop exit
PB: predicated region body
PF: predicated region fallthrough
CT: control target
= control target key end

     0   :  { %s573_s9 = smov 0   ;;  %s728_s0 = inlined_call_operand.vmem [shape: f32[2,8,256], index: 0, kind: input, shape index: {}]   ;;  %s729_s1 = inlined_call_operand.vmem [shape: f32[2,256,392], index: 1, kind: input, shape index: {}]   ;;  %s730_s2 = inlined_call_operand.vmem [shape: f32[2,8,392], index: 2, kind: output, shape index: {}]  }
   0x1 LB: > { %s526_s10 = sadd.s32 4294967295, %s556_s9   ;;  %p530_p0 = scmp.ge.s32.totalorder %s556_s9, 1  ;;  %s556_s9 = sphi %s573_s9, %s12_s9  }
   0x2   : > { %p122_p1 = scmp.lt.s32.totalorder %s556_s9, 3 }
   0x4   : > { %p123_p2 = pnand %p530_p0, %p122_p1 }
   0x5   : > { %p149_p3 = scmp.lt.s32.totalorder (!%p123_p2), %s526_s10, 1 }
   0x6   : > { %126 = sbr.rel (%p123_p2) target bundleno = 214 (0xd6), region = 28 }
   0xb   : > { %s732_s10 = smov (!%p149_p3, %s526_s10), 1  ;;  %vm457_vm0 = vcmask 64512  }
   0xc   : > { %s540_s11 = sshll.u32 %s732_s10, 10  ;;  %s539_s15 = sshll.u32 %s732_s10, 4 }
   0xd   : > { %s587_s14 = scalar_lea.vmem %s729_s1, %s540_s11  ;;  %s153_s18 = scalar_lea.vmem %s728_s0, %s539_s15 }
   0xe   : > { %v227_v0 = vld [vmem:[%s587_s14 + $0x1e8] sm:$0xff]  ;;  %v226_v6 = vld [vmem:[%s587_s14 + $0x1e0] sm:$0xff]  ;;  %v229_v60 = vld [vmem:[%s587_s14 + $0x1f8] sm:$0xff]  ;;  %s541_s19 = sshll.u32 %s732_s10, 5 }
   0xf   : > { %v291_v1 = vld [vmem:[%s587_s14 + $0x3e8] sm:$0xff]  ;;  %334 = vmatpush.msra.mxu2 %v227_v0  ;;  %v290_v7 = vld [vmem:[%s587_s14 + $0x3e0] sm:$0xff]  ;;  %294 = vmatpush.msra.mxu0 %v226_v6  ;;  %v293_v61 = vld [vmem:[%s587_s14 + $0x3f8] sm:$0xff]  ;;  %s163_s22 = scalar_lea.vmem %s730_s2, %s541_s19 }
  0x10   : > { %v223_v2 = vld [vmem:[%s587_s14 + $0x1c8] sm:$0xff]  ;;  %354 = vmatpush.msra.mxu3 %v291_v1  ;;  %v222_v8 = vld [vmem:[%s587_s14 + $0x1c0] sm:$0xff]  ;;  %314 = vmatpush.msra.mxu1 %v290_v7  ;;  %v225_v0 = vld [vmem:[%s587_s14 + $0x1d8] sm:$0xff] }
  0x11   : > { %v287_v3 = vld [vmem:[%s587_s14 + $0x3c8] sm:$0xff]  ;;  %335 = vmatpush.msra.mxu2 %v223_v2  ;;  %v286_v9 = vld [vmem:[%s587_s14 + $0x3c0] sm:$0xff]  ;;  %295 = vmatpush.msra.mxu0 %v222_v8  ;;  %v289_v1 = vld [vmem:[%s587_s14 + $0x3d8] sm:$0xff] }
  0x12   : > { %v219_v4 = vld [vmem:[%s587_s14 + $0x1a8] sm:$0xff]  ;;  %355 = vmatpush.msra.mxu3 %v287_v3  ;;  %v218_v12 = vld [vmem:[%s587_s14 + $0x1a0] sm:$0xff]  ;;  %315 = vmatpush.msra.mxu1 %v286_v9  ;;  %v228_v6 = vld [vmem:[%s587_s14 + $0x1f0] sm:$0xff] }
  0x13   : > { %v283_v5 = vld [vmem:[%s587_s14 + $0x3a8] sm:$0xff]  ;;  %336 = vmatpush.msra.mxu2 %v219_v4  ;;  %v282_v13 = vld [vmem:[%s587_s14 + $0x3a0] sm:$0xff]  ;;  %296 = vmatpush.msra.mxu0 %v218_v12  ;;  %v221_v4 = vld [vmem:[%s587_s14 + $0x1b8] sm:$0xff] }
  0x14   : > { %v215_v10 = vld [vmem:[%s587_s14 + $0x188] sm:$0xff]  ;;  %356 = vmatpush.msra.mxu3 %v283_v5  ;;  %v214_v16 = vld [vmem:[%s587_s14 + $0x180] sm:$0xff]  ;;  %316 = vmatpush.msra.mxu1 %v282_v13  ;;  %v285_v5 = vld [vmem:[%s587_s14 + $0x3b8] sm:$0xff] }
  0x15   : > { %v279_v11 = vld [vmem:[%s587_s14 + $0x388] sm:$0xff]  ;;  %337 = vmatpush.msra.mxu2 %v215_v10  ;;  %v278_v17 = vld [vmem:[%s587_s14 + $0x380] sm:$0xff]  ;;  %297 = vmatpush.msra.mxu0 %v214_v16  ;;  %v292_v7 = vld [vmem:[%s587_s14 + $0x3f0] sm:$0xff] }
  0x16   : > { %v211_v14 = vld [vmem:[%s587_s14 + $0x168] sm:$0xff]  ;;  %357 = vmatpush.msra.mxu3 %v279_v11  ;;  %v210_v20 = vld [vmem:[%s587_s14 + $0x160] sm:$0xff]  ;;  %317 = vmatpush.msra.mxu1 %v278_v17  ;;  %v217_v8 = vld [vmem:[%s587_s14 + $0x198] sm:$0xff] }
  0x17   : > { %v275_v15 = vld [vmem:[%s587_s14 + $0x368] sm:$0xff]  ;;  %338 = vmatpush.msra.mxu2 %v211_v14  ;;  %v274_v21 = vld [vmem:[%s587_s14 + $0x360] sm:$0xff]  ;;  %298 = vmatpush.msra.mxu0 %v210_v20  ;;  %v281_v9 = vld [vmem:[%s587_s14 + $0x398] sm:$0xff] }
  0x18   : > { %v207_v18 = vld [vmem:[%s587_s14 + $0x148] sm:$0xff]  ;;  %358 = vmatpush.msra.mxu3 %v275_v15  ;;  %v206_v24 = vld [vmem:[%s587_s14 + $0x140] sm:$0xff]  ;;  %318 = vmatpush.msra.mxu1 %v274_v21  ;;  %v224_v10 = vld [vmem:[%s587_s14 + $0x1d0] sm:$0xff] }
  0x19   : > { %v271_v19 = vld [vmem:[%s587_s14 + $0x348] sm:$0xff]  ;;  %339 = vmatpush.msra.mxu2 %v207_v18  ;;  %v270_v25 = vld [vmem:[%s587_s14 + $0x340] sm:$0xff]  ;;  %299 = vmatpush.msra.mxu0 %v206_v24  ;;  %v288_v11 = vld [vmem:[%s587_s14 + $0x3d0] sm:$0xff] }
  0x1a   : > { %v203_v22 = vld [vmem:[%s587_s14 + $0x128] sm:$0xff]  ;;  %359 = vmatpush.msra.mxu3 %v271_v19  ;;  %v202_v28 = vld [vmem:[%s587_s14 + $0x120] sm:$0xff]  ;;  %319 = vmatpush.msra.mxu1 %v270_v25  ;;  %v213_v12 = vld [vmem:[%s587_s14 + $0x178] sm:$0xff] }
  0x1b   : > { %v267_v23 = vld [vmem:[%s587_s14 + $0x328] sm:$0xff]  ;;  %340 = vmatpush.msra.mxu2 %v203_v22  ;;  %v266_v29 = vld [vmem:[%s587_s14 + $0x320] sm:$0xff]  ;;  %300 = vmatpush.msra.mxu0 %v202_v28  ;;  %v277_v13 = vld [vmem:[%s587_s14 + $0x378] sm:$0xff] }
  0x1c   : > { %v199_v26 = vld [vmem:[%s587_s14 + $0x108] sm:$0xff]  ;;  %360 = vmatpush.msra.mxu3 %v267_v23  ;;  %v198_v32 = vld [vmem:[%s587_s14 + $0x100] sm:$0xff]  ;;  %320 = vmatpush.msra.mxu1 %v266_v29  ;;  %v220_v14 = vld [vmem:[%s587_s14 + $0x1b0] sm:$0xff] }
  0x1d   : > { %v263_v27 = vld [vmem:[%s587_s14 + $0x308] sm:$0xff]  ;;  %341 = vmatpush.msra.mxu2 %v199_v26  ;;  %v262_v33 = vld [vmem:[%s587_s14 + $0x300] sm:$0xff]  ;;  %301 = vmatpush.msra.mxu0 %v198_v32  ;;  %v284_v15 = vld [vmem:[%s587_s14 + $0x3b0] sm:$0xff] }
  0x1e   : > { %v195_v30 = vld [vmem:[%s587_s14 + $0xe8] sm:$0xff]  ;;  %361 = vmatpush.msra.mxu3 %v263_v27  ;;  %v194_v36 = vld [vmem:[%s587_s14 + $0xe0] sm:$0xff]  ;;  %321 = vmatpush.msra.mxu1 %v262_v33  ;;  %v209_v16 = vld [vmem:[%s587_s14 + $0x158] sm:$0xff] }
  0x1f   : > { %v259_v31 = vld [vmem:[%s587_s14 + $0x2e8] sm:$0xff]  ;;  %342 = vmatpush.msra.mxu2 %v195_v30  ;;  %v258_v37 = vld [vmem:[%s587_s14 + $0x2e0] sm:$0xff]  ;;  %302 = vmatpush.msra.mxu0 %v194_v36  ;;  %v273_v17 = vld [vmem:[%s587_s14 + $0x358] sm:$0xff] }
  0x20   : > { %v191_v34 = vld [vmem:[%s587_s14 + $0xc8] sm:$0xff]  ;;  %362 = vmatpush.msra.mxu3 %v259_v31  ;;  %v190_v40 = vld [vmem:[%s587_s14 + $0xc0] sm:$0xff]  ;;  %322 = vmatpush.msra.mxu1 %v258_v37  ;;  %v216_v18 = vld [vmem:[%s587_s14 + $0x190] sm:$0xff] }
  0x21   : > { %v255_v35 = vld [vmem:[%s587_s14 + $0x2c8] sm:$0xff]  ;;  %343 = vmatpush.msra.mxu2 %v191_v34  ;;  %v254_v41 = vld [vmem:[%s587_s14 + $0x2c0] sm:$0xff]  ;;  %303 = vmatpush.msra.mxu0 %v190_v40  ;;  %v280_v19 = vld [vmem:[%s587_s14 + $0x390] sm:$0xff] }
  0x22   : > { %v187_v38 = vld [vmem:[%s587_s14 + $0xa8] sm:$0xff]  ;;  %363 = vmatpush.msra.mxu3 %v255_v35  ;;  %v186_v44 = vld [vmem:[%s587_s14 + $0xa0] sm:$0xff]  ;;  %323 = vmatpush.msra.mxu1 %v254_v41  ;;  %v205_v20 = vld [vmem:[%s587_s14 + $0x138] sm:$0xff] }
  0x23   : > { %v251_v39 = vld [vmem:[%s587_s14 + $0x2a8] sm:$0xff]  ;;  %344 = vmatpush.msra.mxu2 %v187_v38  ;;  %v250_v45 = vld [vmem:[%s587_s14 + $0x2a0] sm:$0xff]  ;;  %304 = vmatpush.msra.mxu0 %v186_v44  ;;  %v269_v21 = vld [vmem:[%s587_s14 + $0x338] sm:$0xff] }
  0x24   : > { %v183_v42 = vld [vmem:[%s587_s14 + $0x88] sm:$0xff]  ;;  %364 = vmatpush.msra.mxu3 %v251_v39  ;;  %v182_v48 = vld [vmem:[%s587_s14 + $0x80] sm:$0xff]  ;;  %324 = vmatpush.msra.mxu1 %v250_v45  ;;  %v212_v22 = vld [vmem:[%s587_s14 + $0x170] sm:$0xff] }
  0x25   : > { %v247_v43 = vld [vmem:[%s587_s14 + $0x288] sm:$0xff]  ;;  %345 = vmatpush.msra.mxu2 %v183_v42  ;;  %v246_v49 = vld [vmem:[%s587_s14 + $0x280] sm:$0xff]  ;;  %305 = vmatpush.msra.mxu0 %v182_v48  ;;  %v276_v23 = vld [vmem:[%s587_s14 + $0x370] sm:$0xff] }
  0x26   : > { %v179_v46 = vld [vmem:[%s587_s14 + $0x68] sm:$0xff]  ;;  %365 = vmatpush.msra.mxu3 %v247_v43  ;;  %v178_v52 = vld [vmem:[%s587_s14 + $0x60] sm:$0xff]  ;;  %325 = vmatpush.msra.mxu1 %v246_v49  ;;  %v201_v24 = vld [vmem:[%s587_s14 + $0x118] sm:$0xff] }
  0x27   : > { %v243_v47 = vld [vmem:[%s587_s14 + $0x268] sm:$0xff]  ;;  %346 = vmatpush.msra.mxu2 %v179_v46  ;;  %v242_v53 = vld [vmem:[%s587_s14 + $0x260] sm:$0xff]  ;;  %306 = vmatpush.msra.mxu0 %v178_v52  ;;  %v265_v25 = vld [vmem:[%s587_s14 + $0x318] sm:$0xff] }
  0x28   : > { %v175_v50 = vld [vmem:[%s587_s14 + $0x48] sm:$0xff]  ;;  %366 = vmatpush.msra.mxu3 %v243_v47  ;;  %v174_v56 = vld [vmem:[%s587_s14 + $0x40] sm:$0xff]  ;;  %326 = vmatpush.msra.mxu1 %v242_v53  ;;  %v208_v26 = vld [vmem:[%s587_s14 + $0x150] sm:$0xff] }
  0x29   : > { %v239_v51 = vld [vmem:[%s587_s14 + $0x248] sm:$0xff]  ;;  %347 = vmatpush.msra.mxu2 %v175_v50  ;;  %v238_v57 = vld [vmem:[%s587_s14 + $0x240] sm:$0xff]  ;;  %307 = vmatpush.msra.mxu0 %v174_v56  ;;  %v272_v27 = vld [vmem:[%s587_s14 + $0x350] sm:$0xff] }
  0x2a   : > { %v171_v54 = vld [vmem:[%s587_s14 + $0x28] sm:$0xff]  ;;  %367 = vmatpush.msra.mxu3 %v239_v51  ;;  %327 = vmatpush.msra.mxu1 %v238_v57  ;;  %v170_v62 = vld [vmem:[%s587_s14 + $0x20] sm:$0xff]  ;;  %v197_v28 = vld [vmem:[%s587_s14 + $0xf8] sm:$0xff] }
  0x2b   : > { %v235_v55 = vld [vmem:[%s587_s14 + $0x228] sm:$0xff]  ;;  %348 = vmatpush.msra.mxu2 %v171_v54  ;;  %v234_v63 = vld [vmem:[%s587_s14 + $0x220] sm:$0xff]  ;;  %308 = vmatpush.msra.mxu0 %v170_v62  ;;  %v261_v29 = vld [vmem:[%s587_s14 + $0x2f8] sm:$0xff] }
  0x2c   : > { %v167_v58 = vld [vmem:[%s587_s14 + $0x8] sm:$0xff]  ;;  %368 = vmatpush.msra.mxu3 %v235_v55  ;;  %v166_v2 = vld [vmem:[%s587_s14] sm:$0xff]  ;;  %328 = vmatpush.msra.mxu1 %v234_v63  ;;  %v204_v30 = vld [vmem:[%s587_s14 + $0x130] sm:$0xff] }
  0x2d   : > { %v231_v59 = vld [vmem:[%s587_s14 + $0x208] sm:$0xff]  ;;  %349 = vmatpush.msra.mxu2 %v167_v58  ;;  %v230_v3 = vld [vmem:[%s587_s14 + $0x200] sm:$0xff]  ;;  %309 = vmatpush.msra.mxu0 %v166_v2  ;;  %v268_v31 = vld [vmem:[%s587_s14 + $0x330] sm:$0xff] }
  0x2e   : > { %369 = vmatpush.msra.mxu3 %v231_v59  ;;  %329 = vmatpush.msra.mxu1 %v230_v3  ;;  %v193_v32 = vld [vmem:[%s587_s14 + $0xd8] sm:$0xff]  ;;  %v200_v34 = vld [vmem:[%s587_s14 + $0x110] sm:$0xff]  ;;  %v164_v42 = vld [vmem:[%s153_s18] sm:$0xff] }
  0x2f   : > { %414 = vmatpush.msrb.mxu2 %v229_v60  ;;  %374 = vmatpush.msrb.mxu0 %v228_v6  ;;  %v257_v33 = vld [vmem:[%s587_s14 + $0x2d8] sm:$0xff]  ;;  %v264_v35 = vld [vmem:[%s587_s14 + $0x310] sm:$0xff]  ;;  %v165_v43 = vld [vmem:[%s153_s18 + $0x8] sm:$0xff] }
  0x30   : > { %434 = vmatpush.msrb.mxu3 %v293_v61  ;;  %394 = vmatpush.msrb.mxu1 %v292_v7  ;;  %v189_v36 = vld [vmem:[%s587_s14 + $0xb8] sm:$0xff]  ;;  %v196_v38 = vld [vmem:[%s587_s14 + $0xf0] sm:$0xff] }
  0x31   : > { %415 = vmatpush.msrb.mxu2 %v225_v0  ;;  %375 = vmatpush.msrb.mxu0 %v224_v10  ;;  %v253_v37 = vld [vmem:[%s587_s14 + $0x2b8] sm:$0xff]  ;;  %v260_v39 = vld [vmem:[%s587_s14 + $0x2f0] sm:$0xff] }
  0x32   : > { %435 = vmatpush.msrb.mxu3 %v289_v1  ;;  %395 = vmatpush.msrb.mxu1 %v288_v11  ;;  %v185_v40 = vld [vmem:[%s587_s14 + $0x98] sm:$0xff]  ;;  %v192_v44 = vld [vmem:[%s587_s14 + $0xd0] sm:$0xff] }
  0x33   : > { %416 = vmatpush.msrb.mxu2 %v221_v4  ;;  %376 = vmatpush.msrb.mxu0 %v220_v14  ;;  %v249_v41 = vld [vmem:[%s587_s14 + $0x298] sm:$0xff]  ;;  %v256_v45 = vld [vmem:[%s587_s14 + $0x2d0] sm:$0xff] }
  0x34   : > { %436 = vmatpush.msrb.mxu3 %v285_v5  ;;  %396 = vmatpush.msrb.mxu1 %v284_v15  ;;  %v181_v46 = vld [vmem:[%s587_s14 + $0x78] sm:$0xff]  ;;  %v188_v48 = vld [vmem:[%s587_s14 + $0xb0] sm:$0xff] }
  0x35   : > { %417 = vmatpush.msrb.mxu2 %v217_v8  ;;  %377 = vmatpush.msrb.mxu0 %v216_v18  ;;  %v245_v47 = vld [vmem:[%s587_s14 + $0x278] sm:$0xff]  ;;  %v252_v49 = vld [vmem:[%s587_s14 + $0x2b0] sm:$0xff] }
  0x36   : > { %437 = vmatpush.msrb.mxu3 %v281_v9  ;;  %397 = vmatpush.msrb.mxu1 %v280_v19  ;;  %v177_v50 = vld [vmem:[%s587_s14 + $0x58] sm:$0xff]  ;;  %v184_v52 = vld [vmem:[%s587_s14 + $0x90] sm:$0xff] }
  0x37   : > { %418 = vmatpush.msrb.mxu2 %v213_v12  ;;  %378 = vmatpush.msrb.mxu0 %v212_v22  ;;  %v241_v51 = vld [vmem:[%s587_s14 + $0x258] sm:$0xff]  ;;  %v248_v53 = vld [vmem:[%s587_s14 + $0x290] sm:$0xff] }
  0x38   : > { %438 = vmatpush.msrb.mxu3 %v277_v13  ;;  %398 = vmatpush.msrb.mxu1 %v276_v23  ;;  %v173_v54 = vld [vmem:[%s587_s14 + $0x38] sm:$0xff]  ;;  %v180_v56 = vld [vmem:[%s587_s14 + $0x70] sm:$0xff] }
  0x39   : > { %419 = vmatpush.msrb.mxu2 %v209_v16  ;;  %379 = vmatpush.msrb.mxu0 %v208_v26  ;;  %v237_v55 = vld [vmem:[%s587_s14 + $0x238] sm:$0xff]  ;;  %v244_v57 = vld [vmem:[%s587_s14 + $0x270] sm:$0xff] }
  0x3a   : > { %439 = vmatpush.msrb.mxu3 %v273_v17  ;;  %399 = vmatpush.msrb.mxu1 %v272_v27  ;;  %v169_v58 = vld [vmem:[%s587_s14 + $0x18] sm:$0xff]  ;;  %v176_v60 = vld [vmem:[%s587_s14 + $0x50] sm:$0xff] }
  0x3b   : > { %420 = vmatpush.msrb.mxu2 %v205_v20  ;;  %380 = vmatpush.msrb.mxu0 %v204_v30  ;;  %v233_v59 = vld [vmem:[%s587_s14 + $0x218] sm:$0xff]  ;;  %v240_v61 = vld [vmem:[%s587_s14 + $0x250] sm:$0xff] }
  0x3c   : > { %440 = vmatpush.msrb.mxu3 %v269_v21  ;;  %400 = vmatpush.msrb.mxu1 %v268_v31  ;;  %v172_v62 = vld [vmem:[%s587_s14 + $0x30] sm:$0xff] }
  0x3d   : > { %421 = vmatpush.msrb.mxu2 %v201_v24  ;;  %381 = vmatpush.msrb.mxu0 %v200_v34  ;;  %v236_v63 = vld [vmem:[%s587_s14 + $0x230] sm:$0xff] }
  0x3e   : > { %441 = vmatpush.msrb.mxu3 %v265_v25  ;;  %401 = vmatpush.msrb.mxu1 %v264_v35  ;;  %v168_v0 = vld [vmem:[%s587_s14 + $0x10] sm:$0xff] }
  0x3f   : > { %422 = vmatpush.msrb.mxu2 %v197_v28  ;;  %382 = vmatpush.msrb.mxu0 %v196_v38  ;;  %v232_v1 = vld [vmem:[%s587_s14 + $0x210] sm:$0xff] }
  0x40   : > { %442 = vmatpush.msrb.mxu3 %v261_v29  ;;  %402 = vmatpush.msrb.mxu1 %v260_v39 }
  0x41   : > { %423 = vmatpush.msrb.mxu2 %v193_v32  ;;  %370 = vmatmul.f32.vlgmr.msra.gmra.mxu3 %v165_v43 }
  0x42   : > { %443 = vmatpush.msrb.mxu3 %v257_v33  ;;  %350 = vmatmul.f32.vlgmr.msra.gmra.mxu2 %v164_v42 }
  0x43   : > { %424 = vmatpush.msrb.mxu2 %v189_v36  ;;  %383 = vmatpush.msrb.mxu0 %v192_v44 }
  0x44   : > { %444 = vmatpush.msrb.mxu3 %v253_v37  ;;  %403 = vmatpush.msrb.mxu1 %v256_v45 }
  0x45   : > { %425 = vmatpush.msrb.mxu2 %v185_v40  ;;  %384 = vmatpush.msrb.mxu0 %v188_v48 }
  0x46   : > { %445 = vmatpush.msrb.mxu3 %v249_v41  ;;  %404 = vmatpush.msrb.mxu1 %v252_v49 }
  0x47   : > { %426 = vmatpush.msrb.mxu2 %v181_v46  ;;  %385 = vmatpush.msrb.mxu0 %v184_v52 }
  0x48   : > { %446 = vmatpush.msrb.mxu3 %v245_v47  ;;  %405 = vmatpush.msrb.mxu1 %v248_v53 }
  0x49   : > { %427 = vmatpush.msrb.mxu2 %v177_v50  ;;  %310 = vmatmul.f32.vlgmr.msra.gmra.mxu0 %v164_v42 }
  0x4a   : > { %447 = vmatpush.msrb.mxu3 %v241_v51  ;;  %330 = vmatmul.f32.vlgmr.msra.gmra.mxu1 %v165_v43 }
  0x4b   : > { %428 = vmatpush.msrb.mxu2 %v173_v54  ;;  %386 = vmatpush.msrb.mxu0 %v180_v56 }
  0x4c   : > { %448 = vmatpush.msrb.mxu3 %v237_v55  ;;  %406 = vmatpush.msrb.mxu1 %v244_v57 }
  0x4d   : > { %429 = vmatpush.msrb.mxu2 %v169_v58  ;;  %387 = vmatpush.msrb.mxu0 %v176_v60 }
  0x4e   : > { %449 = vmatpush.msrb.mxu3 %v233_v59  ;;  %430 = vmatmul.f32.vlgmr.msrb.gmra.mxu2 %v164_v42 }
  0x4f   : > { %450 = vmatmul.f32.vlgmr.msrb.gmra.mxu3 %v165_v43  ;;  %407 = vmatpush.msrb.mxu1 %v240_v61 }
  0x50   : > { %388 = vmatpush.msrb.mxu0 %v172_v62 }
  0x51   : > { %408 = vmatpush.msrb.mxu1 %v236_v63 }
  0x52   : > { %389 = vmatpush.msrb.mxu0 %v168_v0 }
  0x53   : > { %409 = vmatpush.msrb.mxu1 %v232_v1  ;;  %390 = vmatmul.f32.vlgmr.msrb.gmra.mxu0 %v164_v42 }
  0x54   : > { %410 = vmatmul.f32.vlgmr.msrb.gmra.mxu1 %v165_v43 }
  0xc4   : > { %v371_v3 = vpop.f32.mrf.mxu3 }
  0xc5   : > { %v351_v2 = vpop.f32.mrf.mxu2 }
  0xc6   : > { %v311_v4 = vpop.f32.mrf.mxu0  ;;  %v372_v6 = vadd.f32 %v371_v3, %v351_v2 }
  0xc7   : > { %v331_v5 = vpop.f32.mrf.mxu1 }
  0xc8   : > { %v332_v7 = vadd.f32 %v331_v5, %v311_v4  ;;  %455 = vst [vmem:[%s163_s22 + $0x8] sm:$0xff] %v372_v6 }
  0xca   : > { %454 = vst [vmem:[%s163_s22] sm:$0xff] %v332_v7 }
  0xd0   : > { %v391_v8 = vpop.f32.mrf.mxu0 }
  0xd1   : > { %v411_v9 = vpop.f32.mrf.mxu1  ;;  %v431_v11 = vpop.f32.mrf.mxu2 }
  0xd2   : > { %v412_v10 = vadd.f32 %v411_v9, %v391_v8  ;;  %v451_v12 = vpop.f32.mrf.mxu3 }
  0xd3   : > { %v452_v13 = vadd.f32 %v451_v12, %v431_v11 }
  0xd4   : > { %456 = vst [vmem:[%s163_s22 + $0x10] sm:$0xff] %v412_v10 }
  0xd5   : > { %458 = vst.msk [vmem:[%s163_s22 + $0x18] sm:$0xff] %vm457_vm0, %v452_v13 }
  0xd6 PF: > { %s12_s9 = sadd.s32 1, %s556_s9  }
  0xd7   : > { %p9_p4 = scmp.ge.s32.totalorder %s12_s9, 4  }
  0xd9   :  { %11 = sbr.rel (!%p9_p4) target bundleno = 1 (0x1), region = 61 }

// kernel: _forward_impl.3
= control target key start
LH: loop header
LB: loop body
LE: loop exit
PB: predicated region body
PF: predicated region fallthrough
CT: control target
= control target key end

     0   :  { %s881_s16 = smov [#allocation3]   ;;  %s1184_s0 = inlined_call_operand.vmem [shape: s32[2,2], index: 0, kind: input, shape index: {}]   ;;  %s1185_s1 = inlined_call_operand.vmem [shape: f32[16,392], index: 1, kind: input, shape index: {}]   ;;  %s1186_s2 = inlined_call_operand.vmem [shape: f32[392,32], index: 2, kind: input, shape index: {}]   ;;  %s1187_s3 = inlined_call_operand.vmem [shape: f32[1,32], index: 3, kind: input, shape index: {}]   ;;  %s1188_s4 = inlined_call_operand.vmem [shape: f32[32,32], index: 4, kind: input, shape index: {}]   ;;  %s1189_s5 = inlined_call_operand.vmem [shape: f32[1,32], index: 5, kind: input, shape index: {}]   ;;  %s1190_s6 = inlined_call_operand.vmem [shape: f32[32,26], index: 6, kind: input, shape index: {}]   ;;  %s1191_s7 = inlined_call_operand.vmem [shape: f32[1,26], index: 7, kind: input, shape index: {}]   ;;  %s1192_s8 = inlined_call_operand.vmem [shape: f32[16,4], index: 8, kind: input, shape index: {}]   ;;  %s1193_s9 = inlined_call_operand.vmem [shape: f32[16,6], index: 9, kind: output, shape index: {0}]   ;;  %s1194_s10 = inlined_call_operand.vmem [shape: f32[16,20], index: 10, kind: output, shape index: {1}]  }
   0x1   :  { %s17_s15 = sshll.u32 %s1184_s0, 4  ;;  %s18_s15 = int_to_ptr.vmem [resolvable:$true] %s17_s15 }
   0x2   :  { %20 = dma.vmem_to_smem %s18_s15, 32, %s881_s16, [#allocation2] }
   0x3   :  { %875 = dma.done.wait [#allocation2], 32 }
   0x4   :  { %876 = vsyncadd [#allocation2], 4294967264 }
   0x5   :  { %23 = sfence }
   0x6   :  { %s951_s17 = smov 0  }
   0x7 LB: > { %s957_s18 = sadd.s32 4294967295, %s879_s17   ;;  %p809_p0 = scmp.ge.s32.totalorder %s879_s17, 1  ;;  %s879_s17 = sphi %s951_s17, %s29_s17  }
   0x8   : > { %p308_p1 = scmp.lt.s32.totalorder %s879_s17, 3 }
   0xa   : > { %p309_p2 = pnand %p809_p0, %p308_p1 }
   0xb   : > { %p351_p3 = scmp.lt.s32.totalorder (!%p309_p2), %s957_s18, 1  ;;  %s882_s13 = smov (!%p309_p2), 2  }
   0xc   : > { %312 = sbr.rel (%p309_p2) target bundleno = 722 (0x2d2), region = 52  ;;  %s889_s22 = smov (!%p309_p2), 118  }
   0xd   : > { %s891_s28 = smov (!%p309_p2), 122  }
  0x11   : > { %v419_v0 = vld [vmem:[%s1186_s2 + $0x178] sm:$0xff]  ;;  %v418_v2 = vld [vmem:[%s1186_s2 + $0x170] sm:$0xff]  ;;  %v417_v5 = vld [vmem:[%s1186_s2 + $0x168] sm:$0xff]  ;;  %s352_s15 = scalar_select %p351_p3, %s957_s18, 1  ;;  %vm425_vm0 = vcmask 64512   ;;  %vm518_vm1 = vcmask 261120  }
  0x12   : > { %v387_v1 = vld [vmem:[%s1186_s2 + $0x78] sm:$0xff]  ;;  %469 = vmatpush.msra.mxu2 %v419_v0  ;;  %v386_v3 = vld [vmem:[%s1186_s2 + $0x70] sm:$0xff]  ;;  %v385_v6 = vld [vmem:[%s1186_s2 + $0x68] sm:$0xff]  ;;  %vm574_vm3 = vcmask 48128   ;;  %vm701_vm6 = vcmask 39936   ;;  %vm703_vm8 = vcmask 80896  }
  0x13   : > { %429 = vmatpush.msra.mxu0 %v387_v1  ;;  %v403_v4 = vld [vmem:[%s1186_s2 + $0xf8] sm:$0xff]  ;;  %v402_v7 = vld [vmem:[%s1186_s2 + $0xf0] sm:$0xff]  ;;  %v401_v8 = vld [vmem:[%s1186_s2 + $0xe8] sm:$0xff]  ;;  %s821_s29 = sshll.u32 %s352_s15, 5  ;;  %s1035_s30 = sshll.u32 %s352_s15, 3  ;;  %vm705_vm10 = vcmask 121856  }
  0x14   : > { %449 = vmatpush.msra.mxu1 %v403_v4  ;;  %470 = vmatpush.msra.mxu2 %v418_v2  ;;  %v416_v9 = vld [vmem:[%s1186_s2 + $0x160] sm:$0xff]  ;;  %v415_v12 = vld [vmem:[%s1186_s2 + $0x158] sm:$0xff]  ;;  %v414_v15 = vld [vmem:[%s1186_s2 + $0x150] sm:$0xff]  ;;  %s1055_s24 = scalar_lea.vmem %s1185_s1, %s821_s29  ;;  %s359_s11 = scalar_lea.vmem %s1192_s8, %s1035_s30  ;;  %vm707_vm12 = vcmask 162816  }
  0x15   : > { %430 = vmatpush.msra.mxu0 %v386_v3  ;;  %v384_v10 = vld [vmem:[%s1186_s2 + $0x60] sm:$0xff]  ;;  %v383_v13 = vld [vmem:[%s1186_s2 + $0x58] sm:$0xff]  ;;  %v382_v16 = vld [vmem:[%s1186_s2 + $0x50] sm:$0xff]  ;;  %s367_s14 = scalar_lea.vmem %s1194_s10, %s1035_s30  ;;  %s363_s0 = scalar_lea.vmem %s1193_s9, %s1035_s30 }
  0x16   : > { %450 = vmatpush.msra.mxu1 %v402_v7  ;;  %471 = vmatpush.msra.mxu2 %v417_v5  ;;  %v400_v11 = vld [vmem:[%s1186_s2 + $0xe0] sm:$0xff]  ;;  %v399_v14 = vld [vmem:[%s1186_s2 + $0xd8] sm:$0xff]  ;;  %v398_v17 = vld [vmem:[%s1186_s2 + $0xd0] sm:$0xff] }
  0x17   : > { %431 = vmatpush.msra.mxu0 %v385_v6  ;;  %v413_v18 = vld [vmem:[%s1186_s2 + $0x148] sm:$0xff]  ;;  %v412_v21 = vld [vmem:[%s1186_s2 + $0x140] sm:$0xff]  ;;  %v411_v24 = vld [vmem:[%s1186_s2 + $0x138] sm:$0xff] }
  0x18   : > { %451 = vmatpush.msra.mxu1 %v401_v8  ;;  %472 = vmatpush.msra.mxu2 %v416_v9  ;;  %v381_v19 = vld [vmem:[%s1186_s2 + $0x48] sm:$0xff]  ;;  %v380_v22 = vld [vmem:[%s1186_s2 + $0x40] sm:$0xff]  ;;  %v379_v25 = vld [vmem:[%s1186_s2 + $0x38] sm:$0xff] }
  0x19   : > { %432 = vmatpush.msra.mxu0 %v384_v10  ;;  %v397_v20 = vld [vmem:[%s1186_s2 + $0xc8] sm:$0xff]  ;;  %v396_v23 = vld [vmem:[%s1186_s2 + $0xc0] sm:$0xff]  ;;  %v395_v26 = vld [vmem:[%s1186_s2 + $0xb8] sm:$0xff] }
  0x1a   : > { %452 = vmatpush.msra.mxu1 %v400_v11  ;;  %473 = vmatpush.msra.mxu2 %v415_v12  ;;  %v410_v27 = vld [vmem:[%s1186_s2 + $0x130] sm:$0xff]  ;;  %v420_v29 = vld [vmem:[%s1186_s2 + $0x180] sm:$0xff]  ;;  %v409_v30 = vld [vmem:[%s1186_s2 + $0x128] sm:$0xff]  ;;  %v884_v12 = vmov 2  }
  0x1b   : > { %433 = vmatpush.msra.mxu0 %v383_v13  ;;  %v378_v28 = vld [vmem:[%s1186_s2 + $0x30] sm:$0xff]  ;;  %v371_v32 = vld [vmem:[%s1055_s24 + $0x18] sm:$0xff]  ;;  %v377_v33 = vld [vmem:[%s1186_s2 + $0x28] sm:$0xff]  ;;  %504 = vmatpush.msra.mxu3 %v420_v29 }
  0x1c   : > { %453 = vmatpush.msra.mxu1 %v399_v14  ;;  %474 = vmatpush.msra.mxu2 %v414_v15  ;;  %v394_v31 = vld [vmem:[%s1186_s2 + $0xb0] sm:$0xff]  ;;  %v393_v34 = vld [vmem:[%s1186_s2 + $0xa8] sm:$0xff]  ;;  %v1077_v35 = vld [vmem:[%s359_s11] sm:$0xff]  ;;  %s883_s11 = smov 126   ;;  %v885_v14 = vmov 1   ;;  %v886_v15 = vmov 3  }
  0x1d   : > { %434 = vmatpush.msra.mxu0 %v382_v16  ;;  %v408_v36 = vld [vmem:[%s1186_s2 + $0x120] sm:$0xff]  ;;  %815 = vmatmul.msk.f32.vlgmr.msra.gmra.mxu3 %vm425_vm0, %v371_v32  ;;  %v407_v39 = vld [vmem:[%s1186_s2 + $0x118] sm:$0xff]  ;;  %v406_v42 = vld [vmem:[%s1186_s2 + $0x110] sm:$0xff] }
  0x1e   : > { %454 = vmatpush.msra.mxu1 %v398_v17  ;;  %475 = vmatpush.msra.mxu2 %v413_v18  ;;  %v376_v37 = vld [vmem:[%s1186_s2 + $0x20] sm:$0xff]  ;;  %v375_v40 = vld [vmem:[%s1186_s2 + $0x18] sm:$0xff]  ;;  %v374_v43 = vld [vmem:[%s1186_s2 + $0x10] sm:$0xff] }
  0x1f   : > { %435 = vmatpush.msra.mxu0 %v381_v19  ;;  %v392_v38 = vld [vmem:[%s1186_s2 + $0xa0] sm:$0xff]  ;;  %602 = vrot.lane.b32.xlu0 %v1077_v35, %s882_s13  ;;  %v391_v41 = vld [vmem:[%s1186_s2 + $0x98] sm:$0xff]  ;;  %v390_v44 = vld [vmem:[%s1186_s2 + $0x90] sm:$0xff] }
  0x20   : > { %455 = vmatpush.msra.mxu1 %v397_v20  ;;  %476 = vmatpush.msra.mxu2 %v412_v21  ;;  %v405_v45 = vld [vmem:[%s1186_s2 + $0x108] sm:$0xff]  ;;  %v404_v48 = vld [vmem:[%s1186_s2 + $0x100] sm:$0xff]  ;;  %v370_v50 = vld [vmem:[%s1055_s24 + $0x10] sm:$0xff]  ;;  %v887_v20 = vmov 5.0  }
  0x21   : > { %436 = vmatpush.msra.mxu0 %v380_v22  ;;  %v373_v46 = vld [vmem:[%s1186_s2 + $0x8] sm:$0xff]  ;;  %v372_v49 = vld [vmem:[%s1186_s2] sm:$0xff]  ;;  %v513_v54 = vld [vmem:[%s1188_s4 + $0x18] sm:$0xff]  ;;  %842 = vset.pattern.permute.xlu1 %v884_v12  ;;  %849 = vrcp.f32 %v887_v20 }
  0x22   : > { %456 = vmatpush.msra.mxu1 %v396_v23  ;;  %477 = vmatpush.msra.mxu2 %v411_v24  ;;  %v389_v47 = vld [vmem:[%s1186_s2 + $0x88] sm:$0xff]  ;;  %v368_v51 = vld [vmem:[%s1055_s24] sm:$0xff]  ;;  %v512_v55 = vld [vmem:[%s1188_s4 + $0x10] sm:$0xff]  ;;  %v888_v24 = vmov 0  }
  0x23   : > { %437 = vmatpush.msra.mxu0 %v379_v25  ;;  %v388_v52 = vld [vmem:[%s1186_s2 + $0x80] sm:$0xff]  ;;  %v369_v53 = vld [vmem:[%s1055_s24 + $0x8] sm:$0xff]  ;;  %534 = vmatpush.msrb.mxu3 %v513_v54  ;;  %v546_v59 = vld [vmem:[%s1190_s6 + $0x18] sm:$0xff]  ;;  %s818_s24 = sshll.u32 %s957_s18, 7 }
  0x24   : > { %457 = vmatpush.msra.mxu1 %v395_v26  ;;  %478 = vmatpush.msra.mxu2 %v410_v27  ;;  %v511_v56 = vld [vmem:[%s1188_s4 + $0x8] sm:$0xff]  ;;  %v510_v57 = vld [vmem:[%s1188_s4] sm:$0xff]  ;;  %v545_v60 = vld [vmem:[%s1190_s6 + $0x10] sm:$0xff]  ;;  %s658_s23 = sadd.s32 1, %s818_s24  ;;  %s656_s18 = sld [smem:[#allocation3 + %s818_s24]] }
  0x25   : > { %438 = vmatpush.msra.mxu0 %v378_v28  ;;  %535 = vmatpush.msrb.mxu3 %v512_v55  ;;  %v846_v63 = vld [vmem:[%s1187_s3] ss:$0 sm:$0xff]  ;;  %v544_v9 = vld [vmem:[%s1190_s6 + $0x8] sm:$0xff]  ;;  %s659_s25 = sld [smem:[#allocation3 + %s658_s23]] }
  0x26   : > { %458 = vmatpush.msra.mxu1 %v394_v31  ;;  %479 = vmatpush.msra.mxu2 %v409_v30  ;;  %v543_v10 = vld [vmem:[%s1190_s6] sm:$0xff] }
  0x27   : > { %439 = vmatpush.msra.mxu0 %v377_v33  ;;  %536 = vmatpush.msrb.mxu3 %v511_v56  ;;  %v847_v16 = vld [vmem:[%s1189_s5] ss:$0 sm:$0xff]  ;;  %v850_v21 = vpop.eup %849 }
  0x28   : > { %459 = vmatpush.msra.mxu1 %v393_v34  ;;  %480 = vmatpush.msra.mxu2 %v408_v36  ;;  %v621_v22 = vmul.f32 5.0, %v850_v21  ;;  %v848_v27 = vld [vmem:[%s1191_s7] ss:$0 sm:$0xff]  ;;  %vm625_vm2 = vweird.f32 %v850_v21 }
  0x29   : > { %440 = vmatpush.msra.mxu0 %v376_v37  ;;  %537 = vmatpush.msrb.mxu3 %v510_v57 }
  0x2a   : > { %460 = vmatpush.msra.mxu1 %v392_v38  ;;  %481 = vmatpush.msra.mxu2 %v407_v39  ;;  %v622_v23 = vsub.f32 1.0, %v621_v22  ;;  %s657_s27 = scvt.s32.f32 %s656_s18 }
  0x2b   : > { %441 = vmatpush.msra.mxu0 %v375_v40  ;;  %566 = vmatpush.msra.mxu3 %v546_v59  ;;  %s660_s26 = scvt.s32.f32 %s659_s25 }
  0x2c   : > { %461 = vmatpush.msra.mxu1 %v391_v41  ;;  %482 = vmatpush.msra.mxu2 %v406_v42  ;;  %v623_v25 = vmul.f32 %v850_v21, %v622_v23  ;;  %v890_v42 = vmov 10.0  }
  0x2d   : > { %442 = vmatpush.msra.mxu0 %v374_v43  ;;  %567 = vmatpush.msra.mxu3 %v545_v60  ;;  %v668_v60 = vstv %s660_s26 }
  0x2e   : > { %462 = vmatpush.msra.mxu1 %v390_v44  ;;  %483 = vmatpush.msra.mxu2 %v405_v45  ;;  %v624_v26 = vadd.f32 %v850_v21, %v623_v25 }
  0x2f   : > { %443 = vmatpush.msra.mxu0 %v373_v46  ;;  %568 = vmatpush.msra.mxu3 %v544_v9 }
  0x30   : > { %463 = vmatpush.msra.mxu1 %v389_v47  ;;  %484 = vmatpush.msra.mxu2 %v404_v48  ;;  %v626_v29 = vsel %vm625_vm2, %v850_v21, %v624_v26 }
  0x31   : > { %444 = vmatpush.msra.mxu0 %v372_v49  ;;  %485 = vmatmul.f32.vlgmr.msra.gmra.mxu2 %v370_v50 }
  0x32   : > { %445 = vmatmul.f32.vlgmr.msra.gmra.mxu0 %v368_v51  ;;  %464 = vmatpush.msra.mxu1 %v388_v52 }
  0x33   : > { %465 = vmatmul.f32.vlgmr.msra.gmra.mxu1 %v369_v53  ;;  %569 = vmatpush.msra.mxu3 %v543_v10 }
  0x34   : > { %845 = vset.pattern.permute.xlu0 %v885_v14  ;;  %844 = vset.pattern.permute.xlu2 %v888_v24 }
  0x91   : > { %v603_v58 = vpop.permute.xlu0 %602 }
  0x92   : > { %v605_v61 = vsub.f32 %v1077_v35, %v603_v58 }
  0x94   : > { %v606_v62 = vmul.f32 0.5, %v605_v61  ;;  %631 = vperm.xlu1 %842, %v605_v61  }
  0x96   : > { %608 = vrot.lane.b32.xlu0 %v606_v62, %s883_s11  ;;  %s892_s11 = smov 4  }
  0x9c   : > { %843 = vset.pattern.permute.xlu1 %v886_v15 }
  0x9d   : > { %642 = vperm.xlu1 %843, %v605_v61  }
  0xa0   : > { %v506_v5 = vpop.f32.mrf.mxu3 }
  0xaf   : > { %v446_v0 = vpop.f32.mrf.mxu0 }
  0xb0   : > { %v447_v1 = vadd.f32 %v846_v63, %v446_v0  ;;  %v466_v2 = vpop.f32.mrf.mxu1 }
  0xb2   : > { %v467_v3 = vadd.f32 %v466_v2, %v447_v1 }
  0xb4   : > { %v486_v4 = vpop.f32.mrf.mxu2 }
  0xb5   : > { %v487_v6 = vadd.f32 %v486_v4, %v467_v3 }
  0xb7   : > { %v507_v7 = vadd.f32 %v506_v5, %v487_v6  ;;  %v677_v6 = vstv %s657_s27 }
  0xb9   : > { %v509_v8 = vmax.f32 %v507_v7, 0.0 }
  0xbb   : > { %816 = vmatmul.msk.f32.vlgmr.msrb.gmra.mxu3 %vm518_vm1, %v509_v8 }
 0x108   : > { %v609_v11 = vpop.permute.xlu0 %608 }
 0x109   : > { %v611_v13 = vadd.f32 %v609_v11, %v1077_v35  ;;  %v632_v35 = vpop.permute.xlu1 %631 }
 0x10b   : > { %647 = vperm.xlu0 %845, %v611_v13  }
 0x111   : > { %v643_v39 = vpop.permute.xlu1 %642 }
 0x13e   : > { %v539_v17 = vpop.f32.mrf.mxu3 }
 0x13f   : > { %v540_v18 = vadd.f32 %v847_v16, %v539_v17 }
 0x141   : > { %v542_v19 = vmax.f32 %v540_v18, 0.0 }
 0x143   : > { %817 = vmatmul.msk.f32.vlgmr.msra.gmra.mxu3 %vm518_vm1, %v542_v19 }
 0x17d   : > { %v648_v63 = vpop.permute.xlu0 %647 }
 0x1c6   : > { %v571_v28 = vpop.f32.mrf.mxu3 }
 0x1c7   : > { %v572_v30 = vadd.f32 %v848_v27, %v571_v28 }
 0x1c9   : > { %v627_v31 = vmul.f32 %v626_v29, %v572_v30  ;;  %v575_v32 = vsel %vm574_vm3, %v572_v30, -inf }
 0x1ca   : > { %576 = vmax.xlane.f32.xlu2 %v575_v32 }
 0x1cb   : > { %v628_v33 = vmin.f32 %v627_v31, 4.1351666 }
 0x1cd   : > { %v651_v34 = vmul.f32 1.442695, %v628_v33 }
 0x1cf   : > { %851 = vpow2.f32 %v651_v34 }
 0x1d0   : > { %853 = vrcp.f32 %v890_v42 }
 0x1d5   : > { %v852_v36 = vpop.eup %851 }
 0x1d6   : > { %v653_v37 = vmul.f32 %v852_v36, %v632_v35  ;;  %v654_v40 = vmul.f32 %v852_v36, %v643_v39  ;;  %v854_v43 = vpop.eup %853 }
 0x1d7   : > { %v613_v44 = vmul.f32 10.0, %v854_v43  ;;  %vm617_vm4 = vweird.f32 %v854_v43 }
 0x1d8   : > { %v661_v38 = vmul.f32 0.5, %v653_v37  ;;  %v670_v41 = vmul.f32 0.5, %v654_v40 }
 0x1d9   : > { %v614_v45 = vsub.f32 1.0, %v613_v44 }
 0x1da   : > { %663 = vrot.lane.b32.xlu1 %v661_v38, %s889_s22 }
 0x1db   : > { %v615_v46 = vmul.f32 %v854_v43, %v614_v45 }
 0x1dd   : > { %v616_v48 = vadd.f32 %v854_v43, %v615_v46 }
 0x1df   : > { %v618_v51 = vsel %vm617_vm4, %v854_v43, %v616_v48 }
 0x1e0   : > { %v619_v52 = vmul.f32 %v618_v51, %v572_v30 }
 0x1e2   : > { %672 = vrot.lane.b32.xlu1 %v670_v41, %s889_s22  ;;  %637 = vperm.xlu2 %844, %v611_v13   ;;  %v634_v55 = vmul.f32 %v632_v35, %v619_v52  ;;  %v645_v61 = vmul.f32 %v643_v39, %v619_v52 }
 0x1e4   : > { %v650_v2 = vadd.f32 %v648_v63, %v645_v61 }
 0x23d   : > { %v577_v47 = vpop.xlane.xlu2 %576 }
 0x23e   : > { %v578_v49 = vsub.f32 %v572_v30, %v577_v47 }
 0x240   : > { %v579_v50 = vmul.f32 1.442695, %v578_v49 }
 0x242   : > { %855 = vpow2.f32 %v579_v50 }
 0x245   : > { %v638_v54 = vpop.permute.xlu2 %637 }
 0x246   : > { %v640_v57 = vadd.f32 %v638_v54, %v634_v55 }
 0x248   : > { %v1167_v53 = vpop.eup %855 }
 0x249   : > { %v581_v56 = vsel %vm574_vm3, %v1167_v53, 0.0 }
 0x24a   : > { %582 = vadd.xlane.f32.xlu0 %v581_v56 }
 0x24c   : > { %v664_v58 = vpop.permute.xlu1 %663 }
 0x24d   : > { %v666_v59 = vsub.f32 %v640_v57, %v664_v58  ;;  %v679_v0 = vadd.f32 %v664_v58, %v640_v57 }
 0x24f   : > { %v667_v62 = vmax.f32 %v666_v59, 0.0  ;;  %v680_v4 = vmax.f32 %v679_v0, 0.0 }
 0x251   : > { %v669_v1 = vmin.f32 %v668_v60, %v667_v62  ;;  %v681_v10 = vmin.f32 %v668_v60, %v680_v4 }
 0x253   : > { %686 = vrot.lane.b32.xlu1 %v669_v1, %s891_s28 }
 0x254   : > { %v673_v3 = vpop.permute.xlu1 %672 }
 0x255   : > { %v675_v5 = vsub.f32 %v650_v2, %v673_v3  ;;  %v682_v8 = vadd.f32 %v673_v3, %v650_v2 }
 0x257   : > { %v676_v7 = vmax.f32 %v675_v5, 0.0  ;;  %v683_v11 = vmax.f32 %v682_v8, 0.0 }
 0x259   : > { %v678_v9 = vmin.f32 %v677_v6, %v676_v7  ;;  %v684_v12 = vmin.f32 %v677_v6, %v683_v11 }
 0x25b   : > { %690 = vrot.lane.b32.xlu2 %v678_v9, %s891_s28  ;;  %694 = vrot.lane.b32.xlu1 %v681_v10, %s892_s11 }
 0x263   : > { %698 = vrot.lane.b32.xlu2 %v684_v12, %s892_s11 }
 0x2b5   : > { %v691_v15 = vpop.permute.xlu2 %690 }
 0x2bd   : > { %v583_v13 = vpop.xlane.xlu0 %582  ;;  %v699_v28 = vpop.permute.xlu2 %698 }
 0x2be   : > { %857 = vrcp.f32 %v583_v13  ;;  %v595_v19 = vand.u32 2147483648, %v583_v13  ;;  %v593_v21 = vand.u32 2147483647, %v583_v13  ;;  %vm589_vm7 = vweird.f32 %v583_v13 }
 0x2c0   : > { %v596_v23 = vor.u32 1.1754944e-38, %v595_v19  ;;  %vm594_vm11 = vcmp.eq.f32.partialorder %v593_v21, 8.507059e+37 }
 0x2c4   : > { %v858_v14 = vpop.eup %857 }
 0x2c5   : > { %v585_v16 = vmul.f32 %v858_v14, %v583_v13  ;;  %v687_v17 = vpop.permute.xlu1 %686  ;;  %vm590_vm5 = vweird.f32 %v858_v14 }
 0x2c6   : > { %vm591_vm9 = vmor %vm589_vm7, %vm590_vm5  ;;  %v702_v25 = vsel %vm701_vm6, %v687_v17, %v691_v15 }
 0x2c7   : > { %v586_v18 = vsub.f32 1.0, %v585_v16 }
 0x2c9   : > { %v587_v20 = vmul.f32 %v858_v14, %v586_v18 }
 0x2cb   : > { %v588_v22 = vadd.f32 %v858_v14, %v587_v20 }
 0x2cd   : > { %v592_v24 = vsel %vm591_vm9, %v858_v14, %v588_v22  ;;  %v695_v26 = vpop.permute.xlu1 %694 }
 0x2ce   : > { %v597_v27 = vsel %vm594_vm11, %v596_v23, %v592_v24  ;;  %v704_v29 = vsel %vm703_vm8, %v702_v25, %v695_v26 }
 0x2cf   : > { %v598_v30 = vmul.f32 %v1167_v53, %v597_v27  ;;  %v706_v31 = vsel %vm705_vm10, %v704_v29, %v699_v28 }
 0x2d0   : > { %708 = vst.msk [vmem:[%s367_s14] sm:$0xff] %vm707_vm12, %v706_v31 }
 0x2d1   : > { %599 = vst.msk [vmem:[%s363_s0] sm:$0xff] %vm574_vm3, %v598_v30 }
 0x2d2 PF: > { %s29_s17 = sadd.s32 1, %s879_s17  }
 0x2d3   : > { %p26_p4 = scmp.ge.s32.totalorder %s29_s17, 4  }
 0x2d5   :  { %28 = sbr.rel (!%p26_p4) target bundleno = 7 (0x7), region = 97 }

</bundles_post_ra>
